<compile_context>
chip_gen: v5e
topology: v5e:2x2
jax: 0.10.0
libtpu: 0.0.40
codegen_flags: <defaults>
</compile_context>

<pallas_src>
import functools

import jax
import jax.numpy as jnp
from jax.experimental import pallas as pl
from jax.experimental.pallas import tpu as pltpu

IGNORE_INDEX = -100
EPS = 1e-10


def _seg_loss_kernel(scores_ref, labels_ref, masks_ref, ce_scale_ref, sm_scale_ref,
                     out_ref, prev_ref, *, lm_resident):
    """grid = (stage, T-tile).  Accumulates each stage's loss into its out block."""
    tj = pl.program_id(1)

    @pl.when(tj == 0)
    def _init():
        out_ref[...] = jnp.zeros_like(out_ref)

    p = scores_ref[0].astype(jnp.float32)            # (B, C, Tt), frames on lanes
    B, C, Tt = p.shape

    if lm_resident and labels_ref.shape[-1] > Tt:
        # labels/masks live in VMEM for the whole kernel; slice the current T tile.
        t0 = pl.multiple_of(tj * Tt, 128)            # Tt % 128 == 0 whenever nt > 1
        labels = labels_ref[:, pl.ds(t0, Tt)]        # (B, Tt) int32
        masks = masks_ref[:, pl.ds(t0, Tt)]          # (B, Tt) f32
    else:
        labels = labels_ref[...]
        masks = masks_ref[...]

    ce_scale = ce_scale_ref[...]                     # (B, 1) = 1/((psn+eps)*(n_valid+eps))
    sm_scale = sm_scale_ref[...]                     # (B, 1) = smooth_w/(B*C*(T-1)*(psn+eps))

    # ---- log-softmax over the class (sublane) axis ----
    m = jnp.max(p, axis=1, keepdims=True)            # (B, 1, Tt)
    z = p - m
    lse = jnp.log(jnp.sum(jnp.exp(z), axis=1, keepdims=True))
    logp = z - lse                                    # (B, C, Tt)

    # ---- cross entropy with ignore_index: fused one-hot gather from logp ----
    valid = labels != IGNORE_INDEX
    lbl_safe = jnp.where(valid, labels, 0)
    cls_iota = jax.lax.broadcasted_iota(jnp.int32, (1, C, 1), 1)   # tiny sublane iota
    onehot = cls_iota == lbl_safe[:, None, :]          # (B, C, Tt)
    gathered = jnp.sum(jnp.where(onehot, logp, 0.0), axis=1)       # (B, Tt) = logp[label]
    ce = jnp.where(valid, -gathered, 0.0)
    ce_part = jnp.sum(jnp.sum(ce, axis=1, keepdims=True) * ce_scale)

    # ---- temporal smoothing: clipped squared diff of adjacent log-softmax frames.
    # Previous frame for local column 0 is carried from the previous T tile; for
    # the first tile of a stage it is the frame itself (zero diff), which exactly
    # excludes the non-existent (t=-1, t=0) pair like the reference.
    prev = jnp.where(tj == 0, logp[:, :, 0:1], prev_ref[...])      # (B, C, 1)
    if Tt % 128 == 0:
        rolled = pltpu.roll(logp, shift=1, axis=2)                  # XLU lane shift
        lane0 = jax.lax.broadcasted_iota(jnp.int32, (1, 1, Tt), 2) == 0
        shifted = jnp.where(lane0, prev, rolled)
    elif Tt > 1:
        # small unaligned single-tile case: keep the known-good concat path
        shifted = jnp.concatenate([prev, logp[:, :, :Tt - 1]], axis=2)
    else:
        shifted = prev
    diff = logp - shifted
    mse = jnp.minimum(diff * diff, 16.0)               # diff**2 >= 0, so min == clip
    sm_bt = jnp.sum(mse, axis=1) * masks                # (B, Tt)
    sm_part = jnp.sum(jnp.sum(sm_bt, axis=1, keepdims=True) * sm_scale)

    prev_ref[...] = logp[:, :, Tt - 1:Tt]               # carry last column

    out_ref[...] += ce_part + sm_part                   # lane-dense accumulate


def _tpu_vmem_capacity():
    try:
        return int(pltpu.get_tpu_info().vmem_capacity_bytes)
    except Exception:
        return 128 * 1024 * 1024


def _choose_t_tile(T, B, C, itemsize, vmem_cap, resident_bytes):
    """Largest T tile whose per-step working set fits a generation-aware budget.

    Per T frame ~ double-buffered input + ~6 live f32 temporaries.  If the whole
    T fits, use one tile (no padding); otherwise return a 128-multiple and let the
    caller pad T up to a tile multiple."""
    per_t = B * C * (2 * itemsize + 6 * 4)
    budget = max(vmem_cap * 2 // 5 - resident_bytes, 2 * 1024 * 1024)
    slab_cap = 8 * 1024 * 1024 if vmem_cap >= 96 * 1024 * 1024 else 3 * 1024 * 1024
    t_cap = min(budget // per_t, slab_cap // (B * C * itemsize))
    if t_cap >= T:
        return T
    t_cap = max(int(t_cap), 128)
    nt = -(-T // t_cap)                # tiles needed at the cap
    t_even = -(-T // nt)               # balance tiles (minimal padding waste)
    return -(-t_even // 128) * 128     # round up to a lane multiple


def segmentation_loss_pallas(head_score, labels, masks, precise_sliding_num, *,
                             num_classes, smooth_weight=0.5, loss_weight=1.0,
                             t_tile=None):
    """head_score: (S, B, C, T) float (f32/bf16); labels: (B, T) int; masks: (B, T);
    precise_sliding_num: (B,).  Returns {'loss': scalar} like the PyTorch module."""
    S, B, C, T = head_score.shape
    assert C == num_classes
    # TODO(synk): CrossEntropyLoss(class_weight=...) is not supported (default None path only).

    labels = labels.astype(jnp.int32)
    masks = masks.astype(jnp.float32)
    psn = precise_sliding_num.astype(jnp.float32).reshape(B, 1)

    # ---- stage-invariant scales hoisted out of the kernel ----
    n_valid = jnp.sum((labels != IGNORE_INDEX).astype(jnp.float32))
    inv_psn = 1.0 / (psn + EPS)
    ce_scale = inv_psn / (n_valid + EPS)                           # (B, 1)
    # NOTE: for T == 1 the PyTorch reference yields NaN (mean of empty tensor);
    # here the smoothing term is simply 0 instead.
    denom = float(B * C * max(T - 1, 1))
    sm_scale = inv_psn * (smooth_weight / denom)                   # (B, 1)

    itemsize = jnp.dtype(head_score.dtype).itemsize
    vmem_cap = _tpu_vmem_capacity()

    # labels + masks (int32 + f32), conservatively double-buffered; keep them
    # VMEM-resident for the whole kernel unless pathologically large.
    lm_bytes = 2 * (B * T * 4 + B * T * 4)
    lm_resident = lm_bytes <= vmem_cap // 8

    if t_tile is None:
        t_tile = _choose_t_tile(T, B, C, itemsize, vmem_cap,
                                lm_bytes if lm_resident else 0)
    assert t_tile == T or t_tile % 128 == 0, "t_tile must be T or a multiple of 128"

    # Pad T to a tile multiple (padded frames: label=IGNORE, mask=0 -> contribute 0).
    nt = -(-T // t_tile)
    T_pad = nt * t_tile
    if T_pad != T:
        pad = T_pad - T
        head_score = jnp.pad(head_score, ((0, 0), (0, 0), (0, 0), (0, pad)))
        labels = jnp.pad(labels, ((0, 0), (0, pad)), constant_values=IGNORE_INDEX)
        masks = jnp.pad(masks, ((0, 0), (0, pad)))

    if lm_resident:
        # whole-array blocks with a constant index map -> one DMA for the whole grid
        lbl_spec = pl.BlockSpec((B, T_pad), lambda s, tj: (0, 0))
        msk_spec = pl.BlockSpec((B, T_pad), lambda s, tj: (0, 0))
    else:
        lbl_spec = pl.BlockSpec((B, t_tile), lambda s, tj: (0, tj))
        msk_spec = pl.BlockSpec((B, t_tile), lambda s, tj: (0, tj))

    kernel = functools.partial(_seg_loss_kernel, lm_resident=lm_resident)

    flops = 15 * S * B * C * T_pad
    transcendentals = S * B * C * T_pad + S * B * T_pad
    bytes_accessed = S * B * C * T_pad * itemsize + B * T_pad * 8 + S * 8 * 128 * 4

    out = pl.pallas_call(
        kernel,
        out_shape=jax.ShapeDtypeStruct((S, 8, 128), jnp.float32),
        grid_spec=pltpu.PrefetchScalarGridSpec(
            num_scalar_prefetch=0,
            grid=(S, nt),
            in_specs=[
                pl.BlockSpec((1, B, C, t_tile), lambda s, tj: (s, 0, 0, tj)),
                lbl_spec,
                msk_spec,
                pl.BlockSpec((B, 1), lambda s, tj: (0, 0)),
                pl.BlockSpec((B, 1), lambda s, tj: (0, 0)),
            ],
            out_specs=pl.BlockSpec((1, 8, 128), lambda s, tj: (s, 0, 0)),
            scratch_shapes=[pltpu.VMEM((B, C, 1), jnp.float32)],
        ),
        compiler_params=pltpu.CompilerParams(
            # stage axis "parallel" gives megacore sharding on v7x when S >= 2.
            # TODO(synk): for S == 1 on v7x a boundary-overlapped T split would be
            # needed to occupy both TensorCores.
            dimension_semantics=("parallel", "arbitrary"),
            vmem_limit_bytes=min(vmem_cap * 3 // 4, 96 * 1024 * 1024),
        ),
        cost_estimate=pl.CostEstimate(flops=flops,
                                      transcendentals=transcendentals,
                                      bytes_accessed=bytes_accessed),
    )(head_score, labels, masks, ce_scale, sm_scale)

    return {"loss": jnp.sum(out[:, 0, 0]) * jnp.float32(loss_weight)}


# ---------------- pure-JAX reference (mirrors the PyTorch forward) ----------------
def segmentation_loss_ref(head_score, labels, masks, precise_sliding_num,
                          *, num_classes, smooth_weight=0.5, loss_weight=1.0):
    S, B, C, T = head_score.shape
    psn = precise_sliding_num.astype(jnp.float32)
    loss = jnp.float32(0.0)
    for s in range(S):
        p = head_score[s].astype(jnp.float32)                 # (B, C, T)
        logits = jnp.transpose(p, (0, 2, 1)).reshape(-1, C)
        lbl = labels.reshape(-1)
        valid = lbl != IGNORE_INDEX
        logp = jax.nn.log_softmax(logits, axis=-1)
        nll = -jnp.take_along_axis(logp, jnp.where(valid, lbl, 0)[:, None], axis=1)[:, 0]
        ce = jnp.where(valid, nll, 0.0).reshape(B, T)
        loss += jnp.sum(jnp.sum(ce, axis=-1) / (psn + EPS)) / (jnp.sum(valid) + EPS)
        ls = jax.nn.log_softmax(p, axis=1)                    # (B, C, T)
        mse = jnp.clip((ls[:, :, 1:] - ls[:, :, :-1]) ** 2, 0.0, 16.0) \
              * masks.astype(jnp.float32)[:, None, 1:]
        loss += smooth_weight * jnp.mean(jnp.mean(mse.reshape(B, -1), axis=-1) / (psn + EPS))
    return loss * loss_weight


if __name__ == "__main__":
    keys = jax.random.split(jax.random.PRNGKey(0), 3)

    def make_inputs(key, S, B, C, T, dtype=jnp.float32):
        k1, k2, k3, k4 = jax.random.split(key, 4)
        head_score = jax.random.normal(k1, (S, B, C, T), dtype=dtype)
        masks = (jax.random.uniform(k2, (B, T)) > 0.2).astype(jnp.float32)
        raw = jax.random.randint(k3, (B, T), 0, C, dtype=jnp.int32)
        labels = jnp.where(masks > 0, raw, IGNORE_INDEX).astype(jnp.int32)
        psn = 1.0 + jax.random.uniform(k4, (B,), dtype=jnp.float32)
        return head_score, labels, masks, psn

    def check(name, got, want, rtol=1e-3, atol=1e-4):
        assert jnp.isfinite(got), f"non-finite loss ({name})"
        assert jnp.allclose(got, want, rtol=rtol, atol=atol), (name, got, want)

    # Test 1: small single-tile case (S=2, B=2, C=8, T=16) — concat fallback path.
    hs, lbl, msk, psn = make_inputs(keys[0], 2, 2, 8, 16)
    out = segmentation_loss_pallas(hs, lbl, msk, psn, num_classes=8)
    loss = jax.block_until_ready(out["loss"])
    ref = jax.block_until_ready(segmentation_loss_ref(hs, lbl, msk, psn, num_classes=8))
    check("test1", loss, ref)

    # Test 2: multi T-tile case (T=256, tile=128) — roll path, carried boundary
    # column, VMEM-resident labels/masks sliced per tile, parallel stage axis.
    hs2, lbl2, msk2, psn2 = make_inputs(keys[1], 2, 2, 8, 256)
    out2 = segmentation_loss_pallas(hs2, lbl2, msk2, psn2, num_classes=8, t_tile=128)
    loss2 = jax.block_until_ready(out2["loss"])
    ref2 = jax.block_until_ready(segmentation_loss_ref(hs2, lbl2, msk2, psn2, num_classes=8))
    check("test2", loss2, ref2)

    # Test 3: bf16 scores with T=200 not a multiple of the tile — exercises the
    # wrapper-side padding (label=IGNORE, mask=0) and the bf16 HBM path.
    hs3, lbl3, msk3, psn3 = make_inputs(keys[2], 2, 2, 8, 200, dtype=jnp.bfloat16)
    out3 = segmentation_loss_pallas(hs3, lbl3, msk3, psn3, num_classes=8, t_tile=128)
    loss3 = jax.block_until_ready(out3["loss"])
    ref3 = jax.block_until_ready(segmentation_loss_ref(hs3, lbl3, msk3, psn3, num_classes=8))
    check("test3", loss3, ref3)

    print("KERNEL_OK")
</pallas_src>

<mosaic_0001>
module attributes {stable_mosaic.version = 11 : i64} {
  func.func @_seg_loss_kernel(%arg0: i32, %arg1: i32, %arg2: memref<1x2x8x16xf32, #tpu.memory_space<vmem>>, %arg3: memref<2x16xi32, #tpu.memory_space<vmem>>, %arg4: memref<2x16xf32, #tpu.memory_space<vmem>>, %arg5: memref<2x1xf32, #tpu.memory_space<vmem>>, %arg6: memref<2x1xf32, #tpu.memory_space<vmem>>, %arg7: memref<1x8x128xf32, #tpu.memory_space<vmem>>, %arg8: memref<2x8x1xf32, #tpu.memory_space<vmem>>) attributes {dimension_semantics = [#tpu.dimension_semantics<parallel>, #tpu.dimension_semantics<arbitrary>], iteration_bounds = array<i64: 2, 1>, scalar_prefetch = 0 : i64, scratch_operands = 1 : i64, tpu.core_type = #tpu.core_type<tc>, window_params = [{transform_indices = @transform_0, window_bounds = array<i64: 1, 2, 8, 16>}, {pipeline_mode = #tpu.pipeline_mode<synchronous>, transform_indices = @transform_1, window_bounds = array<i64: 2, 16>}, {pipeline_mode = #tpu.pipeline_mode<synchronous>, transform_indices = @transform_2, window_bounds = array<i64: 2, 16>}, {pipeline_mode = #tpu.pipeline_mode<synchronous>, transform_indices = @transform_3, window_bounds = array<i64: 2, 1>}, {pipeline_mode = #tpu.pipeline_mode<synchronous>, transform_indices = @transform_4, window_bounds = array<i64: 2, 1>}, {transform_indices = @transform_5, window_bounds = array<i64: 1, 8, 128>}]} {
    %c0_i32 = arith.constant 0 : i32
    %0 = arith.cmpi eq, %arg1, %c0_i32 : i32
    %1 = arith.extui %0 : i1 to i32
    %c0_i32_0 = arith.constant 0 : i32
    %2 = arith.cmpi ne, %1, %c0_i32_0 : i32
    scf.if %2 {
      %cst_37 = arith.constant 0.000000e+00 : f32
      %68 = vector.broadcast %cst_37 : f32 to vector<1x8x128xf32>
      %c0_38 = arith.constant 0 : index
      %c0_39 = arith.constant 0 : index
      %c0_40 = arith.constant 0 : index
      %69 = vector.load %arg7[%c0_38, %c0_39, %c0_40] : memref<1x8x128xf32, #tpu.memory_space<vmem>>, vector<1x8x128xf32>
      tpu.vector_store %arg7[%c0_38, %c0_39, %c0_40], %68 {strides = array<i32>} : memref<1x8x128xf32, #tpu.memory_space<vmem>>, vector<1x8x128xf32>,
    } else {
    }
    %c0 = arith.constant 0 : index
    %c0_1 = arith.constant 0 : index
    %c0_2 = arith.constant 0 : index
    %c0_3 = arith.constant 0 : index
    %3 = vector.load %arg2[%c0, %c0_1, %c0_2, %c0_3] : memref<1x2x8x16xf32, #tpu.memory_space<vmem>>, vector<1x2x8x16xf32>
    %4 = vector.shape_cast %3 : vector<1x2x8x16xf32> to vector<2x8x16xf32>
    %c0_4 = arith.constant 0 : index
    %c0_5 = arith.constant 0 : index
    %5 = vector.load %arg3[%c0_4, %c0_5] : memref<2x16xi32, #tpu.memory_space<vmem>>, vector<2x16xi32>
    %c0_6 = arith.constant 0 : index
    %c0_7 = arith.constant 0 : index
    %6 = vector.load %arg4[%c0_6, %c0_7] : memref<2x16xf32, #tpu.memory_space<vmem>>, vector<2x16xf32>
    %c0_8 = arith.constant 0 : index
    %c0_9 = arith.constant 0 : index
    %7 = vector.load %arg5[%c0_8, %c0_9] : memref<2x1xf32, #tpu.memory_space<vmem>>, vector<2x1xf32>
    %c0_10 = arith.constant 0 : index
    %c0_11 = arith.constant 0 : index
    %8 = vector.load %arg6[%c0_10, %c0_11] : memref<2x1xf32, #tpu.memory_space<vmem>>, vector<2x1xf32>
    %cst = arith.constant dense<0xFF800000> : vector<2x16xf32>
    %9 = vector.multi_reduction <maximumf>, %4, %cst [1] : vector<2x8x16xf32> to vector<2x16xf32>
    %10 = vector.shape_cast %9 : vector<2x16xf32> to vector<2x1x16xf32>
    %11 = vector.broadcast %10 : vector<2x1x16xf32> to vector<2x8x16xf32>
    %12 = arith.subf %4, %11 : vector<2x8x16xf32>
    %13 = math.exp %12 : vector<2x8x16xf32>
    %cst_12 = arith.constant dense<0.000000e+00> : vector<2x16xf32>
    %14 = vector.multi_reduction <add>, %13, %cst_12 [1] : vector<2x8x16xf32> to vector<2x16xf32>
    %15 = vector.shape_cast %14 : vector<2x16xf32> to vector<2x1x16xf32>
    %16 = math.log %15 : vector<2x1x16xf32>
    %17 = vector.broadcast %16 : vector<2x1x16xf32> to vector<2x8x16xf32>
    %18 = arith.subf %12, %17 : vector<2x8x16xf32>
    %c-100_i32 = arith.constant -100 : i32
    %19 = vector.broadcast %c-100_i32 : i32 to vector<2x16xi32>
    %20 = arith.cmpi ne, %5, %19 : vector<2x16xi32>
    %c0_i32_13 = arith.constant 0 : i32
    %21 = vector.broadcast %c0_i32_13 : i32 to vector<2x16xi32>
    %22 = arith.select %20, %5, %21 : vector<2x16xi1>, vector<2x16xi32>
    %23 = tpu.iota {dimensions = array<i32: 1>} : vector<1x8x1xi32>
    %24 = vector.shape_cast %22 : vector<2x16xi32> to vector<2x1x16xi32>
    %25 = vector.broadcast %23 : vector<1x8x1xi32> to vector<2x8x16xi32>
    %26 = vector.broadcast %24 : vector<2x1x16xi32> to vector<2x8x16xi32>
    %27 = arith.cmpi eq, %25, %26 : vector<2x8x16xi32>
    %cst_14 = arith.constant 0.000000e+00 : f32
    %28 = vector.broadcast %cst_14 : f32 to vector<2x8x16xf32>
    %29 = arith.select %27, %18, %28 : vector<2x8x16xi1>, vector<2x8x16xf32>
    %cst_15 = arith.constant dense<0.000000e+00> : vector<2x16xf32>
    %30 = vector.multi_reduction <add>, %29, %cst_15 [1] : vector<2x8x16xf32> to vector<2x16xf32>
    %cst_16 = arith.constant 0.000000e+00 : f32
    %31 = vector.broadcast %cst_16 : f32 to vector<2x16xf32>
    %32 = arith.subf %31, %30 : vector<2x16xf32>
    %cst_17 = arith.constant 0.000000e+00 : f32
    %33 = vector.broadcast %cst_17 : f32 to vector<2x16xf32>
    %34 = arith.select %20, %32, %33 : vector<2x16xi1>, vector<2x16xf32>
    %cst_18 = arith.constant dense<0.000000e+00> : vector<2xf32>
    %35 = vector.multi_reduction <add>, %34, %cst_18 [1] : vector<2x16xf32> to vector<2xf32>
    %36 = vector.shape_cast %35 : vector<2xf32> to vector<2x1xf32>
    %37 = arith.mulf %36, %7 : vector<2x1xf32>
    %38 = vector.shape_cast %37 : vector<2x1xf32> to vector<1x2x1xf32>
    %cst_19 = arith.constant dense<0.000000e+00> : vector<1xf32>
    %39 = vector.multi_reduction <add>, %38, %cst_19 [1, 2] : vector<1x2x1xf32> to vector<1xf32>
    %40 = vector.shape_cast %39 : vector<1xf32> to vector<1x1x1xf32>
    %41 = vector.extract %40[0, 0, 0] : f32 from vector<1x1x1xf32>
    %c0_i32_20 = arith.constant 0 : i32
    %42 = arith.cmpi eq, %arg1, %c0_i32_20 : i32
    %43 = vector.extract_strided_slice %18 {offsets = [0, 0, 0], sizes = [2, 8, 1], strides = [1, 1, 1]} : vector<2x8x16xf32> to vector<2x8x1xf32>
    %c0_21 = arith.constant 0 : index
    %c0_22 = arith.constant 0 : index
    %c0_23 = arith.constant 0 : index
    %44 = vector.load %arg8[%c0_21, %c0_22, %c0_23] : memref<2x8x1xf32, #tpu.memory_space<vmem>>, vector<2x8x1xf32>
    %45 = arith.select %42, %43, %44 : vector<2x8x1xf32>
    %46 = vector.extract_strided_slice %18 {offsets = [0, 0, 0], sizes = [2, 8, 15], strides = [1, 1, 1]} : vector<2x8x16xf32> to vector<2x8x15xf32>
    %47 = tpu.concatenate %45, %46 in 2 : vector<2x8x1xf32>, vector<2x8x15xf32> -> vector<2x8x16xf32>
    %48 = arith.subf %18, %47 : vector<2x8x16xf32>
    %49 = arith.mulf %48, %48 : vector<2x8x16xf32>
    %cst_24 = arith.constant 1.600000e+01 : f32
    %50 = vector.broadcast %cst_24 : f32 to vector<2x8x16xf32>
    %51 = arith.minimumf %49, %50 : vector<2x8x16xf32>
    %cst_25 = arith.constant dense<0.000000e+00> : vector<2x16xf32>
    %52 = vector.multi_reduction <add>, %51, %cst_25 [1] : vector<2x8x16xf32> to vector<2x16xf32>
    %53 = arith.mulf %52, %6 : vector<2x16xf32>
    %cst_26 = arith.constant dense<0.000000e+00> : vector<2xf32>
    %54 = vector.multi_reduction <add>, %53, %cst_26 [1] : vector<2x16xf32> to vector<2xf32>
    %55 = vector.shape_cast %54 : vector<2xf32> to vector<2x1xf32>
    %56 = arith.mulf %55, %8 : vector<2x1xf32>
    %57 = vector.shape_cast %56 : vector<2x1xf32> to vector<1x2x1xf32>
    %cst_27 = arith.constant dense<0.000000e+00> : vector<1xf32>
    %58 = vector.multi_reduction <add>, %57, %cst_27 [1, 2] : vector<1x2x1xf32> to vector<1xf32>
    %59 = vector.shape_cast %58 : vector<1xf32> to vector<1x1x1xf32>
    %60 = vector.extract %59[0, 0, 0] : f32 from vector<1x1x1xf32>
    %61 = vector.extract_strided_slice %18 {offsets = [0, 0, 15], sizes = [2, 8, 1], strides = [1, 1, 1]} : vector<2x8x16xf32> to vector<2x8x1xf32>
    %c0_28 = arith.constant 0 : index
    %c0_29 = arith.constant 0 : index
    %c0_30 = arith.constant 0 : index
    %62 = vector.load %arg8[%c0_28, %c0_29, %c0_30] : memref<2x8x1xf32, #tpu.memory_space<vmem>>, vector<2x8x1xf32>
    tpu.vector_store %arg8[%c0_28, %c0_29, %c0_30], %61 {strides = array<i32>} : memref<2x8x1xf32, #tpu.memory_space<vmem>>, vector<2x8x1xf32>,
    %c0_31 = arith.constant 0 : index
    %c0_32 = arith.constant 0 : index
    %c0_33 = arith.constant 0 : index
    %63 = vector.load %arg7[%c0_31, %c0_32, %c0_33] : memref<1x8x128xf32, #tpu.memory_space<vmem>>, vector<1x8x128xf32>
    %64 = arith.addf %41, %60 : f32
    %65 = vector.broadcast %64 : f32 to vector<1x8x128xf32>
    %66 = arith.addf %63, %65 : vector<1x8x128xf32>
    %c0_34 = arith.constant 0 : index
    %c0_35 = arith.constant 0 : index
    %c0_36 = arith.constant 0 : index
    %67 = vector.load %arg7[%c0_34, %c0_35, %c0_36] : memref<1x8x128xf32, #tpu.memory_space<vmem>>, vector<1x8x128xf32>
    tpu.vector_store %arg7[%c0_34, %c0_35, %c0_36], %66 {strides = array<i32>} : memref<1x8x128xf32, #tpu.memory_space<vmem>>, vector<1x8x128xf32>,
    return
  }
  func.func @transform_0(%arg0: i32, %arg1: i32) -> (i32, i32, i32, i32) {
    %c0_i32 = arith.constant 0 : i32
    %c0_i32_0 = arith.constant 0 : i32
    %c0_i32_1 = arith.constant 0 : i32
    return %arg0, %c0_i32, %c0_i32_0, %arg1 : i32, i32, i32, i32
  }
  func.func @transform_1(%arg0: i32, %arg1: i32) -> (i32, i32) {
    %c0_i32 = arith.constant 0 : i32
    %c0_i32_0 = arith.constant 0 : i32
    %c0_i32_1 = arith.constant 0 : i32
    return %c0_i32, %c0_i32_0 : i32, i32
  }
  func.func @transform_2(%arg0: i32, %arg1: i32) -> (i32, i32) {
    %c0_i32 = arith.constant 0 : i32
    %c0_i32_0 = arith.constant 0 : i32
    %c0_i32_1 = arith.constant 0 : i32
    return %c0_i32, %c0_i32_0 : i32, i32
  }
  func.func @transform_3(%arg0: i32, %arg1: i32) -> (i32, i32) {
    %c0_i32 = arith.constant 0 : i32
    %c0_i32_0 = arith.constant 0 : i32
    %c0_i32_1 = arith.constant 0 : i32
    return %c0_i32, %c0_i32_0 : i32, i32
  }
  func.func @transform_4(%arg0: i32, %arg1: i32) -> (i32, i32) {
    %c0_i32 = arith.constant 0 : i32
    %c0_i32_0 = arith.constant 0 : i32
    %c0_i32_1 = arith.constant 0 : i32
    return %c0_i32, %c0_i32_0 : i32, i32
  }
  func.func @transform_5(%arg0: i32, %arg1: i32) -> (i32, i32, i32) {
    %c0_i32 = arith.constant 0 : i32
    %c0_i32_0 = arith.constant 0 : i32
    %c0_i32_1 = arith.constant 0 : i32
    return %arg0, %c0_i32, %c0_i32_0 : i32, i32, i32
  }
}

</mosaic_0001>

<bundles_post_ra>
// kernel: tpu_custom_call.1
= control target key start
LH: loop header
LB: loop body
LE: loop exit
PB: predicated region body
PF: predicated region fallthrough
CT: control target
= control target key end

     0   :  { %10 = vsyncpa [#allocation4], 0  ;;  %s936_s0 = inlined_call_operand.hbm [shape: f32[2,2,8,16], index: 0, kind: input, shape index: {}]   ;;  %s937_s1 = inlined_call_operand.vmem [shape: s32[2,16], index: 1, kind: input, shape index: {}]   ;;  %s938_s2 = inlined_call_operand.vmem [shape: f32[2,16], index: 2, kind: input, shape index: {}]   ;;  %s939_s3 = inlined_call_operand.vmem [shape: f32[2,1], index: 3, kind: input, shape index: {}]   ;;  %s940_s4 = inlined_call_operand.vmem [shape: f32[2,1], index: 4, kind: input, shape index: {}]   ;;  %s941_s5 = inlined_call_operand.hbm [shape: f32[2,8,128], index: 5, kind: output, shape index: {}]  }
   0x1   :  { %12 = vsyncpa [#allocation4 + $0x1], 0 }
   0x2   :  { %13 = vsyncpa [#allocation5], 0 }
   0x3   :  { %15 = vsyncpa [#allocation5 + $0x1], 0  ;;  %s775_s18 = smov 0   ;;  %s777_s19 = smov 0  }
   0x4   :  { %s779_s20 = smov 0   ;;  %s781_s21 = smov 0  }
   0x5   :  { %s783_s22 = smov 0   ;;  %s785_s23 = smov 0  }
   0x6 LB: > { %s533_s24 = sadd.s32 4294967295, %s739_s23   ;;  %s534_s25 = sadd.s32 4294967294, %s739_s23   ;;  %s739_s23 = sphi %s785_s23, %s21_s23   ;;  %s735_s22 = sphi %s783_s22, %s950_s22   ;;  %s731_s21 = sphi %s781_s21, %s949_s21   ;;  %s727_s20 = sphi %s779_s20, %s948_s20   ;;  %s723_s19 = sphi %s777_s19, %s947_s19   ;;  %s719_s18 = sphi %s775_s18, %s946_s18  }
   0x7   : > { %s33_s26 = sadd.s32 1, %s735_s22  ;;  %s42_s27 = sadd.s32 1, %s727_s20 }
   0x8   : > { %p35_p0 = scmp.ge.s32.totalorder %s33_s26, 2  ;;  %p49_p1 = scmp.ne.s32.totalorder %s727_s20, %s723_s19 }
   0x9   : > { %p50_p2 = scmp.eq.s32.totalorder %s739_s23, 0  ;;  %p55_p3 = scmp.ne.s32.totalorder %s723_s19, %s719_s18 }
   0xa   : > { %s952_s26 = smov (%p35_p0, %s33_s26), 0  ;;  %p56_p5 = scmp.eq.s32.totalorder %s533_s24, 0 }
   0xb   : > { %p816_p4 = por %p50_p2, %p49_p1  ;;  %s37_s29 = ssub.s32 %s735_s22, %s952_s26 }
   0xc   : > { %p163_p6 = scmp.eq.s32.totalorder %s533_s24, 1  ;;  %p40_p7 = scmp.eq.s32.totalorder %s37_s29, 0 }
   0xd   : > { %p822_p8 = por %p56_p5, %p55_p3  ;;  %p169_p10 = scmp.eq.s32.totalorder %s534_s25, 1 }
   0xe   : > { %p826_p9 = por %p163_p6, %p49_p1  ;;  %p536_p12 = scmp.ge.s32.totalorder %s739_s23, 2 }
   0xf   : > { %s831_s7 = scalar_select %p40_p7, %s727_s20, %s42_s27  }
  0x10   : > { %p833_p11 = por %p169_p10, %p55_p3  ;;  %p564_p13 = scmp.lt.s32.totalorder %s739_s23, 2 }
  0x11   : > { %s201_s9 = sand.u32 1, %s727_s20   ;;  %s547_s11 = sshll.u32 %s735_s22, 4 }
  0x12   : > { %s537_s10 = sshll.u32 %s201_s9, 4  ;;  %s211_s14 = scalar_lea.hbm %s936_s0, %s547_s11 }
  0x13   : > { %s205_s15 = scalar_lea.vmem [#allocation3], %s537_s10  ;;  %s212_s17 = sshll.u32 %s211_s14, 4  ;;  %s213_s17 = int_to_ptr.hbm [resolvable:$true] %s212_s17 }
  0x14   : > { %s214_s16 = sshll.u32 %s205_s15, 4  ;;  %p557_p0 = pnand %p564_p13, %p816_p4  ;;  %s215_s16 = int_to_ptr.vmem [resolvable:$true] %s214_s16 }
  0x15   : > { %p540_p1 = scmp.ge.s32.totalorder %s739_s23, 1  ;;  %s202_s24 = scalar_lea.sflag [#allocation4], %s201_s9 }
  0x16   : > { %s741_s25 = smov 128   ;;  %s742_s27 = smov 8  }
  0x17   : > { %559 = dma.hbm_to_vmem [thread:$0]  (!%p557_p0), %s213_s17, 256, %s215_s16, %s202_s24, %s741_s25, %s741_s25, %s742_s27  }
  0x18   : > { %p222_p2 = scmp.lt.s32.totalorder %s739_s23, 3 }
  0x1a   : > { %p223_p3 = pnand %p540_p1, %p222_p2 }
  0x1b   : > { %s849_s29 = sand.u32 (!%p223_p3), 1, %s723_s19  }
  0x1c   : > { %226 = sbr.rel (%p223_p3) target bundleno = 533 (0x215), region = 40  ;;  %s541_s10 = sshll.u32 (!%p223_p3), %s849_s29, 4 }
  0x1d   : > { %s229_s11 = scalar_lea.sflag (!%p223_p3), [#allocation4], %s849_s29  ;;  %s232_s12 = scalar_lea.vmem (!%p223_p3), [#allocation3], %s541_s10 }
  0x21   : > { %710 = dma.done.wait (%p822_p8), %s229_s11, 256  }
  0x22   : > { %712 = vsyncadd (%p822_p8), %s229_s11, 4294967040  ;;  %vm271_vm0 = vcmask 130048   ;;  %v266_v0 = vld [vmem:[%s232_s12 + $0x8] sm:$0xff]  ;;  %v265_v1 = vld [vmem:[%s232_s12] sm:$0xff]  ;;  %s743_s28 = smov 1   ;;  %v314_v44 = vlaneseq  ;;  %vm341_vm4 = vcmask 1041409  }
  0x23   : > { %v279_v2 = vsel %vm271_vm0, %v266_v0, -inf  ;;  %v272_v3 = vsel %vm271_vm0, %v265_v1, -inf  ;;  %v267_v42 = vld [vmem:[%s937_s1] sm:$0x3]  ;;  %vm345_vm5 = vcmask 123904   ;;  %vm376_vm6 = vcmask 7168  }
  0x24   : > { %v280_v4 = vrot.slane %v279_v2, 4  ;;  %v273_v5 = vrot.slane %v272_v3, 4  ;;  %vm312_vm1 = vcmp.ne.s32.totalorder %v267_v42, 4294967196  ;;  %v315_v46 = vshrl.u32 %v314_v44, 7  ;;  %s744_s15 = smov 113   ;;  %s542_s27 = sshll.u32 %s849_s29, 3 }
  0x25   : > { %v313_v43 = vsel %vm312_vm1, %v267_v42, 0  ;;  %vm350_vm7 = vcmask 1024   ;;  %s544_s10 = sshll.u32 %s731_s21, 3  ;;  %s259_s13 = scalar_lea.vmem [#allocation6], %s542_s27 }
  0x26   : > { %v281_v6 = vmax.f32 %v279_v2, %v280_v4  ;;  %v274_v7 = vmax.f32 %v272_v3, %v273_v5  ;;  %v316_v45 = vrot.slane %v313_v43, 1  ;;  %v317_v47 = vperm.slane %v313_v43, 0  ;;  %s450_s14 = sshll.u32 %s259_s13, 4  ;;  %s438_s17 = scalar_lea.sflag [#allocation5], %s849_s29  ;;  %s451_s14 = int_to_ptr.vmem [resolvable:$true] %s450_s14 }
  0x27   : > { %s677_s11 = scalar_lea.hbm %s941_s5, 16 }
  0x28   : > { %v282_v8 = vrot.slane %v281_v6, 2  ;;  %v275_v9 = vrot.slane %v274_v7, 2  ;;  %v318_v48 = vperm.slane %v316_v45, 0  ;;  %vm319_vm2 = vcmp.eq.s32.totalorder %v315_v46, %v317_v47 }
  0x2a   : > { %v283_v10 = vmax.f32 %v281_v6, %v282_v8  ;;  %v276_v11 = vmax.f32 %v274_v7, %v275_v9  ;;  %vm320_vm3 = vcmp.eq.s32.totalorder %v315_v46, %v318_v48 }
  0x2c   : > { %v284_v12 = vrot.slane %v283_v10, 1  ;;  %v277_v13 = vrot.slane %v276_v11, 1 }
  0x2e   : > { %v285_v14 = vmax.f32 %v283_v10, %v284_v12  ;;  %v278_v15 = vmax.f32 %v276_v11, %v277_v13 }
  0x30   : > { %v287_v16 = vsub.f32 %v266_v0, %v285_v14  ;;  %v286_v17 = vsub.f32 %v265_v1, %v278_v15 }
  0x32   : > { %v290_v18 = vmul.f32 1.442695, %v287_v16  ;;  %v288_v19 = vmul.f32 1.442695, %v286_v17 }
  0x34   : > { %619 = vpow2.f32 %v290_v18 }
  0x35   : > { %621 = vpow2.f32 %v288_v19 }
  0x3a   : > { %v620_v20 = vpop.eup %619 }
  0x3b   : > { %v622_v21 = vpop.eup %621  ;;  %v299_v22 = vsel %vm271_vm0, %v620_v20, 0.0 }
  0x3c   : > { %v300_v23 = vrot.slane %v299_v22, 4  ;;  %v292_v24 = vsel %vm271_vm0, %v622_v21, 0.0 }
  0x3d   : > { %v293_v25 = vrot.slane %v292_v24, 4 }
  0x3e   : > { %v301_v26 = vadd.f32 %v300_v23, %v299_v22 }
  0x3f   : > { %v294_v27 = vadd.f32 %v293_v25, %v292_v24  ;;  %v268_v24 = vld [vmem:[%s938_s2] sm:$0x3] }
  0x40   : > { %v302_v28 = vrot.slane %v301_v26, 2 }
  0x41   : > { %v295_v29 = vrot.slane %v294_v27, 2 }
  0x42   : > { %v303_v30 = vadd.f32 %v302_v28, %v301_v26  ;;  %v400_v28 = vrot.slane %v268_v24, 1 }
  0x43   : > { %v296_v31 = vadd.f32 %v295_v29, %v294_v27 }
  0x44   : > { %v304_v32 = vrot.slane %v303_v30, 1 }
  0x45   : > { %v297_v33 = vrot.slane %v296_v31, 1 }
  0x46   : > { %v305_v34 = vadd.f32 %v304_v32, %v303_v30 }
  0x47   : > { %v298_v35 = vadd.f32 %v297_v33, %v296_v31 }
  0x48   : > { %623 = vlog2.f32 %v305_v34 }
  0x49   : > { %625 = vlog2.f32 %v298_v35 }
  0x4e   : > { %v624_v36 = vpop.eup %623 }
  0x4f   : > { %v309_v37 = vmul.f32 0.6931472, %v624_v36  ;;  %v626_v38 = vpop.eup %625 }
  0x50   : > { %v307_v40 = vmul.f32 0.6931472, %v626_v38 }
  0x51   : > { %v861_v39 = vsub.f32 %v287_v16, %v309_v37  ;;  %v269_v37 = vld [vmem:[%s939_s3] sm:$0x3] }
  0x52   : > { %v864_v41 = vsub.f32 %v286_v17, %v307_v40 }
  0x53   : > { %372 = vrot.lane.b32.xlu0 %v861_v39, %s743_s28  ;;  %v322_v50 = vsel %vm320_vm3, %v861_v39, 0.0 }
  0x54   : > { %v321_v49 = vsel %vm319_vm2, %v864_v41, 0.0  ;;  %v330_v52 = vsel %vm271_vm0, %v322_v50, 0.0 }
  0x55   : > { %v323_v51 = vsel %vm271_vm0, %v321_v49, 0.0  ;;  %v331_v54 = vrot.slane %v330_v52, 4 }
  0x56   : > { %v324_v53 = vrot.slane %v323_v51, 4 }
  0x57   : > { %v332_v56 = vadd.f32 %v331_v54, %v330_v52 }
  0x58   : > { %v325_v55 = vadd.f32 %v324_v53, %v323_v51 }
  0x59   : > { %v333_v58 = vrot.slane %v332_v56, 2 }
  0x5a   : > { %v326_v57 = vrot.slane %v325_v55, 2 }
  0x5b   : > { %370 = vrot.lane.b32.xlu0 %v864_v41, %s743_s28  ;;  %v334_v60 = vadd.f32 %v333_v58, %v332_v56  ;;  %s448_s28 = scalar_lea.hbm %s941_s5, %s544_s10 }
  0x5c   : > { %v327_v59 = vadd.f32 %v326_v57, %v325_v55  ;;  %s452_s16 = sshll.u32 %s448_s28, 4  ;;  %s453_s16 = int_to_ptr.hbm [resolvable:$true] %s452_s16 }
  0x5d   : > { %v335_v62 = vrot.slane %v334_v60, 1  ;;  %s671_s24 = sshra.s32 %s453_s16, 4  ;;  %s672_s24 = int_to_ptr.hbm [resolvable:$true] %s671_s24 }
  0x5e   : > { %v328_v61 = vrot.slane %v327_v59, 1  ;;  %s673_s25 = scalar_lea.hbm %s672_s24, 8  ;;  %p678_p7 = scmp.lt.s32.totalorder %s672_s24, %s941_s5 }
  0x5f   : > { %v336_v0 = vadd.f32 %v335_v62, %v334_v60  ;;  %p674_p4 = scmp.ne.s32.totalorder %s672_s24, %s673_s25  ;;  %p679_p8 = scmp.lt.s32.totalorder %s677_s11, %s673_s25 }
  0x60   : > { %v329_v63 = vadd.f32 %v328_v61, %v327_v59 }
  0x61   : > { %v338_v2 = vsub.f32 0.0, %v336_v0  ;;  %p675_p5 = pnand %p674_p4, %p826_p9  ;;  %p680_p10 = por %p679_p8, %p678_p7 }
  0x62   : > { %v337_v1 = vsub.f32 0.0, %v329_v63 }
  0x63   : > { %424 = vrot.lane.b32.xlu0 %v864_v41, %s744_s15  ;;  %p676_p6 = pneg %p675_p5 }
  0x64   : > { %v342_v3 = vsel %vm341_vm4, %v338_v2, %v337_v1 }
  0x65   : > { %v344_v4 = vsel %vm312_vm1, %v342_v3, 0.0  ;;  %p681_p13 = pnand %p680_p10, %p676_p6 }
  0x66   : > { %v346_v5 = vsel %vm345_vm5, %v344_v4, 0.0 }
  0x67   : > { %347 = vadd.xlane.f32.xlu1 %v346_v5 }
  0xc5   : > { %v373_v6 = vpop.permute.xlu0 %372 }
  0xc6   : > { %v378_v7 = vsel %vm376_vm6, %v861_v39, %v373_v6 }
  0xc7   : > { %v380_v8 = vsub.f32 %v861_v39, %v378_v7 }
  0xc9   : > { %v382_v9 = vmul.f32 %v380_v8, %v380_v8 }
  0xcb   : > { %v384_v10 = vmin.f32 %v382_v9, 16.0 }
  0xcd   : > { %v392_v11 = vsel %vm271_vm0, %v384_v10, 0.0  ;;  %v371_v12 = vpop.permute.xlu0 %370 }
  0xce   : > { %v393_v13 = vrot.slane %v392_v11, 4  ;;  %v377_v14 = vsel %vm376_vm6, %v864_v41, %v371_v12 }
  0xcf   : > { %v379_v15 = vsub.f32 %v864_v41, %v377_v14  ;;  %v270_v41 = vld [vmem:[%s940_s4] sm:$0x3] }
  0xd0   : > { %v394_v16 = vadd.f32 %v393_v13, %v392_v11 }
  0xd1   : > { %v381_v17 = vmul.f32 %v379_v15, %v379_v15 }
  0xd2   : > { %v395_v18 = vrot.slane %v394_v16, 2 }
  0xd3   : > { %v383_v19 = vmin.f32 %v381_v17, 16.0 }
  0xd4   : > { %v396_v20 = vadd.f32 %v395_v18, %v394_v16 }
  0xd5   : > { %v385_v21 = vsel %vm271_vm0, %v383_v19, 0.0  ;;  %v425_v59 = vpop.permute.xlu0 %424 }
  0xd6   : > { %v386_v22 = vrot.slane %v385_v21, 4  ;;  %v397_v23 = vrot.slane %v396_v20, 1 }
  0xd8   : > { %v387_v25 = vadd.f32 %v386_v22, %v385_v21  ;;  %v398_v27 = vadd.f32 %v397_v23, %v396_v20 }
  0xda   : > { %v388_v26 = vrot.slane %v387_v25, 2  ;;  %v404_v31 = vmul.f32 %v400_v28, %v398_v27  ;;  %v348_v38 = vpop.xlane.xlu1 %347 }
  0xdb   : > { %v349_v40 = vmul.f32 %v348_v38, %v269_v37 }
  0xdc   : > { %v389_v29 = vadd.f32 %v388_v26, %v387_v25  ;;  %v407_v34 = vrot.slane %v404_v31, 7 }
  0xdd   : > { %v351_v42 = vsel %vm350_vm7, %v349_v40, 0.0 }
  0xde   : > { %v390_v30 = vrot.slane %v389_v29, 1  ;;  %352 = vadd.xlane.f32.xlu2 %v351_v42 }
  0xe0   : > { %v391_v32 = vadd.f32 %v390_v30, %v389_v29 }
  0xe2   : > { %v403_v33 = vmul.f32 %v391_v32, %v268_v24 }
  0xe4   : > { %v408_v35 = vsel %vm341_vm4, %v407_v34, %v403_v33 }
  0xe5   : > { %v410_v36 = vsel %vm345_vm5, %v408_v35, 0.0 }
  0xe6   : > { %411 = vadd.xlane.f32.xlu1 %v410_v36 }
  0xff   : > { %426 = vrot.lane.b32.xlu1 %v861_v39, %s744_s15 }
 0x151   : > { %v353_v46 = vpop.xlane.xlu2 %352 }
 0x152   : > { %v354_v47 = vrot.slane %v353_v46, 4 }
 0x154   : > { %v355_v39 = vadd.f32 %v354_v47, %v353_v46 }
 0x156   : > { %v356_v48 = vrot.slane %v355_v39, 2 }
 0x158   : > { %v357_v49 = vadd.f32 %v356_v48, %v355_v39 }
 0x159   : > { %v412_v43 = vpop.xlane.xlu1 %411 }
 0x15a   : > { %v413_v44 = vmul.f32 %v412_v43, %v270_v41  ;;  %v358_v50 = vrot.slane %v357_v49, 1 }
 0x15c   : > { %v414_v45 = vsel %vm350_vm7, %v413_v44, 0.0  ;;  %v359_v51 = vadd.f32 %v358_v50, %v357_v49 }
 0x15d   : > { %415 = vadd.xlane.f32.xlu2 %v414_v45 }
 0x15e   : > { %548 = vpush %v359_v51 }
 0x171   : > { %v427_v60 = vpop.permute.xlu1 %426 }
 0x18f   : > { %s549_s30 = spop %548 }
 0x1d0   : > { %v416_v52 = vpop.xlane.xlu2 %415 }
 0x1d1   : > { %v417_v53 = vrot.slane %v416_v52, 4 }
 0x1d3   : > { %v418_v54 = vadd.f32 %v417_v53, %v416_v52 }
 0x1d5   : > { %v419_v55 = vrot.slane %v418_v54, 2 }
 0x1d7   : > { %v420_v56 = vadd.f32 %v419_v55, %v418_v54 }
 0x1d9   : > { %v421_v57 = vrot.slane %v420_v56, 1 }
 0x1db   : > { %v422_v58 = vadd.f32 %v421_v57, %v420_v56 }
 0x1dd   : > { %550 = vpush %v422_v58 }
 0x20e   : > { %s551_s9 = spop %550 }
 0x20f   : > { %s433_s15 = sadd.f32 %s551_s9, %s549_s30 }
 0x211   : > { %v434_v61 = vstv %s433_s15 }
 0x212   : > { %436 = vst [vmem:[%s259_s13] sm:$0xff] %v434_v61 }
 0x213   : > { %684 = shalt.err (!%p681_p13)
}
 0x214   : > { %554 = dma.vmem_to_hbm [thread:$0]  (%p826_p9), %s451_s14, 128, %s453_s16, %s438_s17  }
 0x215 PF: > { %s464_s29 = sand.u32 1, %s719_s18   ;;  %p561_p0 = pnand %p536_p12, %p833_p11 }
 0x216   : > { %s465_s28 = scalar_lea.sflag [#allocation5], %s464_s29 }
 0x217   : > { %p562_p1 = pneg %p561_p0 }
 0x219   : > { %714 = dma.done.wait (%p562_p1), %s465_s28, 128  }
 0x21a   : > { %716 = vsyncadd (%p562_p1), %s465_s28, 4294967168  ;;  %s21_s23 = sadd.s32 1, %s739_s23   ;;  %s946_s18 = smov %s723_s19 }
 0x21b   : > { %p18_p2 = scmp.ge.s32.totalorder %s21_s23, 4   ;;  %s947_s19 = smov %s727_s20 }
 0x21c   : > { %s948_s20 = smov %s831_s7  ;;  %s949_s21 = smov %s735_s22 }
 0x21d   : > { %s950_s22 = smov %s952_s26  ;;  %20 = sbr.rel (!%p18_p2) target bundleno = 6 (0x6), region = 89 }
 0x222   :  { %471 = vsyncpa [#allocation4], 1 }
 0x223   :  { %473 = vsyncpa [#allocation4 + $0x1], 1 }
 0x224   :  { %474 = vsyncpa [#allocation5], 1 }
 0x225   :  { %476 = vsyncpa [#allocation5 + $0x1], 1 }

</bundles_post_ra>
